<compile_context>
chip_gen: v5e
topology: v5e:2x2
jax: 0.10.0
libtpu: 0.0.40
codegen_flags: <defaults>
</compile_context>

<pallas_src>
import functools

import jax
import jax.numpy as jnp
from jax import lax
from jax.experimental import pallas as pl
from jax.experimental.pallas import tpu as pltpu

# Contract W's "in" dim (last) with the activation's "in" dim (first):
#   (out, in) x (in, TM) -> (out, TM)   i.e.  W @ act, no transposes.
_DOT_W_ACT = (((1,), (0,)), ((), ()))


def _make_env_model_kernel(num_hidden):
    """Fused MLP kernel: `num_hidden` ReLU hidden layers + mu head.

    Ref layout (positional): x, [w1, b1, ..., wN, bN], w_mu, b_mu, out.
    x / activations / out are feature-major: (features, TM) with the batch on
    the 128-wide lane axis. Weights are PyTorch (out, in); biases are
    (out, 1) f32 (lane-broadcast). All matmuls accumulate in f32 on the MXU.
    """

    def kernel(*refs):
        x_ref, out_ref = refs[0], refs[-1]
        p = refs[1:-1]

        act = x_ref[...]                                   # (d_in, TM)
        for i in range(num_hidden):
            w_ref, b_ref = p[2 * i], p[2 * i + 1]
            h = lax.dot_general(w_ref[...], act, _DOT_W_ACT,
                                preferred_element_type=jnp.float32)
            # bias-add + ReLU in f32 on the VPU (lane-dense), back to compute dtype
            act = jnp.maximum(h + b_ref[...], 0.0).astype(w_ref.dtype)

        wmu_ref, bmu_ref = p[-2], p[-1]
        mu = lax.dot_general(wmu_ref[...], act, _DOT_W_ACT,
                             preferred_element_type=jnp.float32)
        out_ref[...] = (mu + bmu_ref[...]).astype(out_ref.dtype)  # (out_dim, TM), lane-dense store

    return kernel


def prepare_params(params, num_hidden, compute_dtype=jnp.bfloat16):
    """One-time param prep OUTSIDE the jitted hot path.

    Keeps the PyTorch (out, in) weight layout (no transpose / relayout copy),
    casts weights to the MXU compute dtype, and reshapes biases to (out, 1)
    f32 so they lane-broadcast across the batch tile.
    """
    prepped = []
    for i in range(1, num_hidden + 1):
        prepped.append(jnp.asarray(params[f"layer{i}.weight"], compute_dtype))
        prepped.append(jnp.asarray(params[f"layer{i}.bias"], jnp.float32)[:, None])
    prepped.append(jnp.asarray(params["mu.weight"], compute_dtype))
    prepped.append(jnp.asarray(params["mu.bias"], jnp.float32)[:, None])
    return tuple(prepped)


def _round_up(n, m):
    return ((n + m - 1) // m) * m


@functools.partial(jax.jit, static_argnames=("block_m",))
def env_model_forward(x, prepped_params, block_m=4096):
    """Fused EnvModel forward.

    x:              (B, input_size) array.
    prepped_params: output of prepare_params().
    block_m:        max batch (lane) tile, static, multiple of 128.
                    Per-step VMEM is KiB-scale at these feature widths, so
                    4096 fits comfortably on v5e/v6e (128 MiB VMEM) and
                    v7x (64 MiB). Re-derive if hidden widths grow.
    """
    B, d_in = x.shape
    compute_dtype = prepped_params[0].dtype
    out_dim = prepped_params[-2].shape[0]
    num_hidden = len(prepped_params) // 2 - 1

    # Lane tile: multiple of 128; aim for >= 2 grid steps when the batch
    # allows so v7x's two TensorCores both get work ("parallel" axis).
    half = -(-B // 2)
    tm = max(128, min(block_m, _round_up(half, 128)))
    b_pad = _round_up(B, tm)

    # Single fused pass over x: transpose to feature-major + cast + pad.
    xk = x.T.astype(compute_dtype)                     # (d_in, B)
    if b_pad != B:
        xk = jnp.pad(xk, ((0, 0), (0, b_pad - B)))     # padded cols sliced off below

    # Weights/biases: full-array blocks whose block index never changes ->
    # DMA'd once, resident in VMEM for the whole grid.
    def resident(a):
        return pl.BlockSpec(a.shape, lambda i: (0,) * a.ndim)

    in_specs = [pl.BlockSpec((d_in, tm), lambda i: (0, i))]
    in_specs += [resident(p) for p in prepped_params]

    out = pl.pallas_call(
        _make_env_model_kernel(num_hidden),
        out_shape=jax.ShapeDtypeStruct((out_dim, b_pad), x.dtype),
        grid=(b_pad // tm,),
        in_specs=in_specs,
        out_specs=pl.BlockSpec((out_dim, tm), lambda i: (0, i)),
        compiler_params=pltpu.CompilerParams(
            dimension_semantics=("parallel",)),        # both TCs on v7x
    )(xk, *prepped_params)

    # Tiny (out_dim, B) -> (B, out_dim) pass back to the module's layout.
    # Callers that can consume feature-major output directly can skip this.
    return out[:, :B].T


# ----------------------------------------------------------------------------
# Init / reference (test harness)
# ----------------------------------------------------------------------------

def init_params(key, input_size, hidden_sizes, output_size):
    """Deterministic synthetic init (mimics nn.Linear shapes)."""
    layer_sizes = (input_size,) + tuple(hidden_sizes)
    params = {}
    keys = jax.random.split(key, len(hidden_sizes) + 1)
    for i in range(1, len(hidden_sizes) + 1):
        fan_in = layer_sizes[i - 1]
        fan_out = layer_sizes[i]
        kw, kb = jax.random.split(keys[i - 1])
        scale = 1.0 / jnp.sqrt(fan_in)
        params[f"layer{i}.weight"] = jax.random.uniform(
            kw, (fan_out, fan_in), jnp.float32, -scale, scale)
        params[f"layer{i}.bias"] = jax.random.uniform(
            kb, (fan_out,), jnp.float32, -scale, scale)
    kw, kb = jax.random.split(keys[-1])
    fan_in = layer_sizes[-1]
    scale = 1.0 / jnp.sqrt(fan_in)
    params["mu.weight"] = jax.random.uniform(
        kw, (output_size, fan_in), jnp.float32, -scale, scale)
    params["mu.bias"] = jax.random.uniform(
        kb, (output_size,), jnp.float32, -scale, scale)
    return params


def reference_forward(x, params, num_hidden):
    """Plain-JAX f32 reference mirroring the PyTorch forward exactly."""
    out = x
    for i in range(1, num_hidden + 1):
        out = out @ params[f"layer{i}.weight"].T + params[f"layer{i}.bias"]
        out = jnp.maximum(out, 0.0)
    return out @ params["mu.weight"].T + params["mu.bias"]


if __name__ == "__main__":
    # Small shapes consistent with the module: state+action -> next-state model.
    batch = 8
    input_size = 16
    hidden_sizes = (32, 32)
    output_size = 8
    num_hidden = len(hidden_sizes)

    key = jax.random.PRNGKey(0)
    k_x, k_p, k_x2, k_x3 = jax.random.split(key, 4)
    x = jax.random.normal(k_x, (batch, input_size), jnp.float32)
    params = init_params(k_p, input_size, hidden_sizes, output_size)
    ref = reference_forward(x, params, num_hidden)

    # 1) f32 compute path: exact check vs reference.
    pp_f32 = prepare_params(params, num_hidden, compute_dtype=jnp.float32)
    mu_f32 = env_model_forward(x, pp_f32)
    jax.block_until_ready(mu_f32)
    assert mu_f32.shape == (batch, output_size)
    assert jnp.allclose(mu_f32, ref, atol=1e-5, rtol=1e-5), "f32 mismatch vs reference"

    # 2) bf16 compute path (default, MXU-native): relaxed tolerance.
    pp_bf16 = prepare_params(params, num_hidden, compute_dtype=jnp.bfloat16)
    mu_bf16 = env_model_forward(x, pp_bf16)
    jax.block_until_ready(mu_bf16)
    assert mu_bf16.shape == (batch, output_size)
    assert jnp.allclose(mu_bf16, ref, atol=5e-2, rtol=5e-2), "bf16 mismatch vs reference"

    # 3) Non-aligned batch exercising the padded multi-step grid (2 tiles of 256).
    batch2 = 300
    x2 = jax.random.normal(k_x2, (batch2, input_size), jnp.float32)
    ref2 = reference_forward(x2, params, num_hidden)
    mu2 = env_model_forward(x2, pp_f32)
    jax.block_until_ready(mu2)
    assert mu2.shape == (batch2, output_size)
    assert jnp.allclose(mu2, ref2, atol=1e-5, rtol=1e-5), "tiled-grid mismatch vs reference"

    # 4) Larger batch with an explicit small tile -> 3-step grid.
    batch3 = 1000
    x3 = jax.random.normal(k_x3, (batch3, input_size), jnp.float32)
    ref3 = reference_forward(x3, params, num_hidden)
    mu3 = env_model_forward(x3, pp_f32, block_m=384)
    jax.block_until_ready(mu3)
    assert mu3.shape == (batch3, output_size)
    assert jnp.allclose(mu3, ref3, atol=1e-5, rtol=1e-5), "multi-tile mismatch vs reference"

    print("KERNEL_OK")
</pallas_src>

<mosaic_0001>
module attributes {stable_mosaic.version = 11 : i64} {
  func.func @kernel(%arg0: i32, %arg1: memref<16x128xf32, #tpu.memory_space<vmem>>, %arg2: memref<32x16xf32, #tpu.memory_space<vmem>>, %arg3: memref<32x1xf32, #tpu.memory_space<vmem>>, %arg4: memref<32x32xf32, #tpu.memory_space<vmem>>, %arg5: memref<32x1xf32, #tpu.memory_space<vmem>>, %arg6: memref<8x32xf32, #tpu.memory_space<vmem>>, %arg7: memref<8x1xf32, #tpu.memory_space<vmem>>, %arg8: memref<8x128xf32, #tpu.memory_space<vmem>>) attributes {dimension_semantics = [#tpu.dimension_semantics<parallel>], iteration_bounds = array<i64: 1>, scalar_prefetch = 0 : i64, scratch_operands = 0 : i64, tpu.core_type = #tpu.core_type<tc>, window_params = [{transform_indices = @transform_0, window_bounds = array<i64: 16, 128>}, {pipeline_mode = #tpu.pipeline_mode<synchronous>, transform_indices = @transform_1, window_bounds = array<i64: 32, 16>}, {pipeline_mode = #tpu.pipeline_mode<synchronous>, transform_indices = @transform_2, window_bounds = array<i64: 32, 1>}, {pipeline_mode = #tpu.pipeline_mode<synchronous>, transform_indices = @transform_3, window_bounds = array<i64: 32, 32>}, {pipeline_mode = #tpu.pipeline_mode<synchronous>, transform_indices = @transform_4, window_bounds = array<i64: 32, 1>}, {pipeline_mode = #tpu.pipeline_mode<synchronous>, transform_indices = @transform_5, window_bounds = array<i64: 8, 32>}, {pipeline_mode = #tpu.pipeline_mode<synchronous>, transform_indices = @transform_6, window_bounds = array<i64: 8, 1>}, {transform_indices = @transform_7, window_bounds = array<i64: 8, 128>}]} {
    %c0 = arith.constant 0 : index
    %c0_0 = arith.constant 0 : index
    %0 = vector.load %arg1[%c0, %c0_0] : memref<16x128xf32, #tpu.memory_space<vmem>>, vector<16x128xf32>
    %c0_1 = arith.constant 0 : index
    %c0_2 = arith.constant 0 : index
    %1 = vector.load %arg2[%c0_1, %c0_2] : memref<32x16xf32, #tpu.memory_space<vmem>>, vector<32x16xf32>
    %cst = arith.constant dense<0.000000e+00> : vector<32x128xf32>
    %2 = tpu.matmul %1, %0, %cst {dimension_numbers = #tpu.dot_dimension_numbers<[1], [0], [0], [1], [0, 0, 1, 1], [], []>} : vector<32x16xf32>, vector<16x128xf32>, vector<32x128xf32> -> vector<32x128xf32>
    %c0_3 = arith.constant 0 : index
    %c0_4 = arith.constant 0 : index
    %3 = vector.load %arg3[%c0_3, %c0_4] : memref<32x1xf32, #tpu.memory_space<vmem>>, vector<32x1xf32>
    %4 = vector.broadcast %3 : vector<32x1xf32> to vector<32x128xf32>
    %5 = arith.addf %2, %4 : vector<32x128xf32>
    %cst_5 = arith.constant 0.000000e+00 : f32
    %6 = vector.broadcast %cst_5 : f32 to vector<32x128xf32>
    %7 = arith.maximumf %5, %6 : vector<32x128xf32>
    %c0_6 = arith.constant 0 : index
    %c0_7 = arith.constant 0 : index
    %8 = vector.load %arg4[%c0_6, %c0_7] : memref<32x32xf32, #tpu.memory_space<vmem>>, vector<32x32xf32>
    %cst_8 = arith.constant dense<0.000000e+00> : vector<32x128xf32>
    %9 = tpu.matmul %8, %7, %cst_8 {dimension_numbers = #tpu.dot_dimension_numbers<[1], [0], [0], [1], [0, 0, 1, 1], [], []>} : vector<32x32xf32>, vector<32x128xf32>, vector<32x128xf32> -> vector<32x128xf32>
    %c0_9 = arith.constant 0 : index
    %c0_10 = arith.constant 0 : index
    %10 = vector.load %arg5[%c0_9, %c0_10] : memref<32x1xf32, #tpu.memory_space<vmem>>, vector<32x1xf32>
    %11 = vector.broadcast %10 : vector<32x1xf32> to vector<32x128xf32>
    %12 = arith.addf %9, %11 : vector<32x128xf32>
    %cst_11 = arith.constant 0.000000e+00 : f32
    %13 = vector.broadcast %cst_11 : f32 to vector<32x128xf32>
    %14 = arith.maximumf %12, %13 : vector<32x128xf32>
    %c0_12 = arith.constant 0 : index
    %c0_13 = arith.constant 0 : index
    %15 = vector.load %arg6[%c0_12, %c0_13] : memref<8x32xf32, #tpu.memory_space<vmem>>, vector<8x32xf32>
    %cst_14 = arith.constant dense<0.000000e+00> : vector<8x128xf32>
    %16 = tpu.matmul %15, %14, %cst_14 {dimension_numbers = #tpu.dot_dimension_numbers<[1], [0], [0], [1], [0, 0, 1, 1], [], []>} : vector<8x32xf32>, vector<32x128xf32>, vector<8x128xf32> -> vector<8x128xf32>
    %c0_15 = arith.constant 0 : index
    %c0_16 = arith.constant 0 : index
    %17 = vector.load %arg7[%c0_15, %c0_16] : memref<8x1xf32, #tpu.memory_space<vmem>>, vector<8x1xf32>
    %18 = vector.broadcast %17 : vector<8x1xf32> to vector<8x128xf32>
    %19 = arith.addf %16, %18 : vector<8x128xf32>
    %c0_17 = arith.constant 0 : index
    %c0_18 = arith.constant 0 : index
    %20 = vector.load %arg8[%c0_17, %c0_18] : memref<8x128xf32, #tpu.memory_space<vmem>>, vector<8x128xf32>
    tpu.vector_store %arg8[%c0_17, %c0_18], %19 {strides = array<i32>} : memref<8x128xf32, #tpu.memory_space<vmem>>, vector<8x128xf32>,
    return
  }
  func.func @transform_0(%arg0: i32) -> (i32, i32) {
    %c0_i32 = arith.constant 0 : i32
    %c0_i32_0 = arith.constant 0 : i32
    return %c0_i32, %arg0 : i32, i32
  }
  func.func @transform_1(%arg0: i32) -> (i32, i32) {
    %c0_i32 = arith.constant 0 : i32
    %c0_i32_0 = arith.constant 0 : i32
    %c0_i32_1 = arith.constant 0 : i32
    return %c0_i32, %c0_i32_0 : i32, i32
  }
  func.func @transform_2(%arg0: i32) -> (i32, i32) {
    %c0_i32 = arith.constant 0 : i32
    %c0_i32_0 = arith.constant 0 : i32
    %c0_i32_1 = arith.constant 0 : i32
    return %c0_i32, %c0_i32_0 : i32, i32
  }
  func.func @transform_3(%arg0: i32) -> (i32, i32) {
    %c0_i32 = arith.constant 0 : i32
    %c0_i32_0 = arith.constant 0 : i32
    %c0_i32_1 = arith.constant 0 : i32
    return %c0_i32, %c0_i32_0 : i32, i32
  }
  func.func @transform_4(%arg0: i32) -> (i32, i32) {
    %c0_i32 = arith.constant 0 : i32
    %c0_i32_0 = arith.constant 0 : i32
    %c0_i32_1 = arith.constant 0 : i32
    return %c0_i32, %c0_i32_0 : i32, i32
  }
  func.func @transform_5(%arg0: i32) -> (i32, i32) {
    %c0_i32 = arith.constant 0 : i32
    %c0_i32_0 = arith.constant 0 : i32
    %c0_i32_1 = arith.constant 0 : i32
    return %c0_i32, %c0_i32_0 : i32, i32
  }
  func.func @transform_6(%arg0: i32) -> (i32, i32) {
    %c0_i32 = arith.constant 0 : i32
    %c0_i32_0 = arith.constant 0 : i32
    %c0_i32_1 = arith.constant 0 : i32
    return %c0_i32, %c0_i32_0 : i32, i32
  }
  func.func @transform_7(%arg0: i32) -> (i32, i32) {
    %c0_i32 = arith.constant 0 : i32
    %c0_i32_0 = arith.constant 0 : i32
    return %c0_i32, %arg0 : i32, i32
  }
}

</mosaic_0001>

<bundles_post_ra>
// kernel: env_model_forward.1
= control target key start
LH: loop header
LB: loop body
LE: loop exit
PB: predicated region body
PF: predicated region fallthrough
CT: control target
= control target key end

     0   :  { %v234_v2 = vmov 0   ;;  %vm56_vm0 = vcmask 130048   ;;  %vm130_vm1 = vcmask 261120   ;;  %s347_s0 = inlined_call_operand.vmem [shape: f32[16,128], index: 0, kind: input, shape index: {}]   ;;  %s348_s1 = inlined_call_operand.vmem [shape: f32[32,16], index: 1, kind: input, shape index: {}]   ;;  %s349_s2 = inlined_call_operand.vmem [shape: f32[32,1], index: 2, kind: input, shape index: {}]   ;;  %s350_s4 = inlined_call_operand.vmem [shape: f32[32,1], index: 4, kind: input, shape index: {}]   ;;  %s351_s6 = inlined_call_operand.vmem [shape: f32[8,1], index: 6, kind: input, shape index: {}]   ;;  %s352_s3 = inlined_call_operand.vmem [shape: f32[32,32], index: 3, kind: input, shape index: {}]   ;;  %s353_s5 = inlined_call_operand.vmem [shape: f32[8,32], index: 5, kind: input, shape index: {}]   ;;  %s354_s7 = inlined_call_operand.vmem [shape: f32[8,128], index: 7, kind: output, shape index: {}]  }
   0x1   :  { %v27_v0 = vld [vmem:[%s347_s0 + $0x8] sm:$0xff]  ;;  %v26_v1 = vld [vmem:[%s347_s0] sm:$0xff]  ;;  %232 = vset.pattern.permute.xlu1 %v234_v2  ;;  %231 = vset.pattern.permute.xlu0 %v234_v2  ;;  %v35_v4 = vld [vmem:[%s349_s2 + $0x18] sm:$0xff] }
   0x2   :  { %83 = vmatpush.msra.mxu0 %v27_v0  ;;  %v28_v3 = vld [vmem:[%s348_s1] sm:$0xff]  ;;  %v33_v5 = vld [vmem:[%s349_s2 + $0x8] sm:$0xff]  ;;  %220 = vmatpush.msra.mxu1 %v27_v0  ;;  %v31_v6 = vld [vmem:[%s348_s1 + $0x18] sm:$0xff] }
   0x3   :  { %53 = vperm.xlu0 %231, %v35_v4   ;;  %43 = vperm.xlu1 %232, %v33_v5   ;;  %v34_v7 = vld [vmem:[%s349_s2 + $0x10] sm:$0xff]  ;;  %v32_v8 = vld [vmem:[%s349_s2] sm:$0xff]  ;;  %v29_v9 = vld [vmem:[%s348_s1 + $0x8] sm:$0xff] }
   0x4   :  { %84 = vmatpush.msra.mxu0 %v26_v1  ;;  %221 = vmatpush.msra.mxu1 %v26_v1  ;;  %v107_v10 = vld [vmem:[%s350_s4 + $0x8] sm:$0xff]  ;;  %v106_v11 = vld [vmem:[%s350_s4] sm:$0xff]  ;;  %v30_v12 = vld [vmem:[%s348_s1 + $0x10] sm:$0xff] }
   0x5   :  { %211 = vmatmul.msk.f32.vlgmr.msra.gmra.mxu0 %vm56_vm0, %v28_v3  ;;  %214 = vmatmul.msk.f32.vlgmr.msra.gmra.mxu1 %vm56_vm0, %v31_v6  ;;  %v109_v18 = vld [vmem:[%s350_s4 + $0x18] sm:$0xff]  ;;  %v108_v21 = vld [vmem:[%s350_s4 + $0x10] sm:$0xff]  ;;  %v177_v27 = vld [vmem:[%s351_s6] sm:$0xff] }
   0x6   :  { %233 = vset.pattern.permute.xlu2 %v234_v2  ;;  %v102_v32 = vld [vmem:[%s352_s3] sm:$0xff]  ;;  %v103_v33 = vld [vmem:[%s352_s3 + $0x8] sm:$0xff]  ;;  %v104_v34 = vld [vmem:[%s352_s3 + $0x10] sm:$0xff] }
   0x7   :  { %127 = vperm.xlu2 %233, %v109_v18   ;;  %v105_v35 = vld [vmem:[%s352_s3 + $0x18] sm:$0xff]  ;;  %v176_v52 = vld [vmem:[%s353_s5] sm:$0xff] }
   0xb   :  { %48 = vperm.xlu0 %231, %v34_v7   ;;  %38 = vperm.xlu1 %232, %v32_v8  }
   0xd   :  { %212 = vmatmul.msk.f32.gmra.mxu0 %vm56_vm0, %v29_v9 }
   0xf   :  { %122 = vperm.xlu2 %233, %v108_v21  }
  0x13   :  { %117 = vperm.xlu0 %231, %v107_v10   ;;  %112 = vperm.xlu1 %232, %v106_v11  }
  0x15   :  { %213 = vmatmul.msk.f32.gmra.mxu0 %vm56_vm0, %v30_v12 }
  0x17   :  { %180 = vperm.xlu2 %233, %v177_v27  }
  0x61   :  { %v128_v36 = vpop.permute.xlu2 %127 }
  0x69   :  { %v123_v38 = vpop.permute.xlu2 %122 }
  0x71   :  { %v181_v53 = vpop.permute.xlu2 %180 }
  0x75   :  { %v54_v13 = vpop.permute.xlu0 %53  ;;  %v44_v19 = vpop.permute.xlu1 %43 }
  0x7d   :  { %v49_v22 = vpop.permute.xlu0 %48  ;;  %v39_v23 = vpop.permute.xlu1 %38 }
  0x82   :  { %v86_v14 = vpop.f32.mrf.mxu0  ;;  %v95_v15 = vpop.f32.mrf.mxu1 }
  0x83   :  { %v96_v16 = vadd.f32 %v95_v15, %v54_v13  ;;  %v87_v28 = vadd.f32 %v86_v14, %v39_v23 }
  0x85   :  { %v101_v17 = vmax.f32 %v96_v16, 0.0  ;;  %v98_v31 = vmax.f32 %v87_v28, 0.0  ;;  %v118_v43 = vpop.permute.xlu0 %117  ;;  %v113_v47 = vpop.permute.xlu1 %112 }
  0x87   :  { %155 = vmatpush.msrb.mxu1 %v101_v17  ;;  %222 = vmatpush.msra.mxu2 %v101_v17 }
  0x88   :  { %223 = vmatpush.msra.mxu3 %v101_v17 }
  0x8a   :  { %v89_v20 = vpop.f32.mrf.mxu0 }
  0x8b   :  { %v90_v25 = vadd.f32 %v89_v20, %v44_v19 }
  0x8d   :  { %v99_v30 = vmax.f32 %v90_v25, 0.0 }
  0x92   :  { %v92_v24 = vpop.f32.mrf.mxu0 }
  0x93   :  { %v93_v26 = vadd.f32 %v92_v24, %v49_v22 }
  0x95   :  { %v100_v29 = vmax.f32 %v93_v26, 0.0 }
  0x97   :  { %156 = vmatpush.msrb.mxu1 %v100_v29  ;;  %224 = vmatpush.msra.mxu2 %v100_v29 }
  0x98   :  { %225 = vmatpush.msra.mxu3 %v100_v29 }
  0x99   :  { %157 = vmatpush.msrb.mxu1 %v99_v30  ;;  %226 = vmatpush.msra.mxu2 %v99_v30 }
  0x9a   :  { %227 = vmatpush.msra.mxu3 %v99_v30 }
  0x9b   :  { %158 = vmatpush.msrb.mxu1 %v98_v31  ;;  %228 = vmatpush.msra.mxu2 %v98_v31 }
  0x9c   :  { %229 = vmatpush.msra.mxu3 %v98_v31  ;;  %215 = vmatmul.msk.f32.vlgmr.msrb.gmra.mxu1 %vm130_vm1, %v102_v32 }
  0x9d   :  { %216 = vmatmul.msk.f32.vlgmr.msra.gmra.mxu2 %vm130_vm1, %v103_v33  ;;  %217 = vmatmul.msk.f32.vlgmr.msra.gmra.mxu3 %vm130_vm1, %v104_v34 }
  0xa5   :  { %218 = vmatmul.msk.f32.gmra.mxu3 %vm130_vm1, %v105_v35 }
 0x119   :  { %v160_v44 = vpop.f32.mrf.mxu1 }
 0x11a   :  { %v161_v48 = vadd.f32 %v160_v44, %v113_v47 }
 0x11c   :  { %v172_v51 = vmax.f32 %v161_v48, 0.0 }
 0x120   :  { %v166_v37 = vpop.f32.mrf.mxu3  ;;  %v163_v39 = vpop.f32.mrf.mxu2 }
 0x121   :  { %v167_v41 = vadd.f32 %v166_v37, %v123_v38  ;;  %v164_v45 = vadd.f32 %v163_v39, %v118_v43 }
 0x123   :  { %v174_v49 = vmax.f32 %v167_v41, 0.0  ;;  %v173_v50 = vmax.f32 %v164_v45, 0.0 }
 0x128   :  { %v169_v40 = vpop.f32.mrf.mxu3 }
 0x129   :  { %v170_v42 = vadd.f32 %v169_v40, %v128_v36 }
 0x12b   :  { %v175_v46 = vmax.f32 %v170_v42, 0.0 }
 0x12d   :  { %198 = vmatpush.msrb.mxu2 %v175_v46 }
 0x12f   :  { %199 = vmatpush.msrb.mxu2 %v174_v49 }
 0x131   :  { %200 = vmatpush.msrb.mxu2 %v173_v50 }
 0x133   :  { %201 = vmatpush.msrb.mxu2 %v172_v51 }
 0x134   :  { %219 = vmatmul.msk.f32.vlgmr.msrb.gmra.mxu2 %vm130_vm1, %v176_v52 }
 0x1b7   :  { %v203_v54 = vpop.f32.mrf.mxu2 }
 0x1b8   :  { %v204_v55 = vadd.f32 %v203_v54, %v181_v53 }
 0x1ba   :  { %206 = vst [vmem:[%s354_s7] sm:$0xff] %v204_v55 }

</bundles_post_ra>
